<compile_context>
chip_gen: v7x
topology: tpu7x:2x2x1
jax: 0.10.0
libtpu: 0.0.40
codegen_flags: <defaults>
</compile_context>

<pallas_src>
import jax
import jax.numpy as jnp
from jax import lax
from jax.experimental import pallas as pl
from jax.experimental.pallas import tpu as pltpu

LANES = 128  # lane width of a vreg


def _cdiv(a, b):
    return (a + b - 1) // b


def _round_up(a, b):
    return _cdiv(a, b) * b


def _make_prediction_loss_kernel(num_experts, n_valid, tile_rows, tiles_per_chunk,
                                 has_tail):
    tile_elems = tile_rows * LANES
    groups = tile_rows // 8

    def kernel(*refs):
        t_ref = refs[0]
        logit_refs = refs[1:1 + num_experts]
        meta_ref = refs[1 + num_experts]
        out_ref = refs[2 + num_experts]

        s = pl.program_id(1)  # step within chunk (arbitrary / reduction axis)

        @pl.when(s == 0)
        def _init():
            out_ref[...] = jnp.zeros_like(out_ref)

        # Hard 0/1 targets: t*sig(x) + (1-t)*(1-sig(x)) == sigmoid(x if t else -x).
        t_pos = t_ref[...] > 0.5

        # Per-expert weighted probabilities, reduced over the (leading) expert axis
        # with plain VPU adds; loads are bf16/f32 and upcast immediately to f32.
        system = None
        for e in range(num_experts):
            x = logit_refs[e][...].astype(jnp.float32)
            m = meta_ref[e].astype(jnp.float32)
            p = jax.nn.sigmoid(jnp.where(t_pos, x, -x))
            pm = p * m
            system = pm if system is None else system + pm

        # cappedLog
        cushioned = system + 1e-10
        logged = jnp.log(jnp.where(cushioned > 1.0 - 1e-10, system, cushioned))

        def fold(v):
            # (tile_rows,128) -> (groups,8,128) splits the sublane axis on vreg
            # boundaries (layout-preserving); the leading-axis sum is pure VPU adds
            # and yields a lane-dense (8,128) partial sum.
            return jnp.sum(v.reshape(groups, 8, LANES), axis=0)

        if not has_tail:
            # N is tile-aligned: no masking anywhere.
            out_ref[...] += fold(logged)
        else:
            c = pl.program_id(0)
            tile_start = (c * tiles_per_chunk + s) * tile_elems
            is_tail = tile_start + tile_elems > n_valid

            @pl.when(jnp.logical_not(is_tail))
            def _full_tile():
                out_ref[...] += fold(logged)

            @pl.when(is_tail)
            def _tail_tile():
                # Only the boundary (and fully-padded) tiles pay for the mask.
                row = lax.broadcasted_iota(jnp.int32, (tile_rows, LANES), 0)
                col = lax.broadcasted_iota(jnp.int32, (tile_rows, LANES), 1)
                valid = (tile_start + row * LANES + col) < n_valid
                out_ref[...] += fold(jnp.where(valid, logged, 0.0))

    return kernel


def prediction_loss(expert_logits_list, meta_expert, targets, num_alleles_per_site,
                    *, tile_rows=2048, max_chunks=2, input_dtype=jnp.bfloat16):
    """
    expert_logits_list : list of E arrays, each [N, 1] (pre-sigmoid expert outputs)
    meta_expert        : [numSites, E] gating weights
    targets            : [N] hard 0/1 labels
    num_alleles_per_site : list of ints, sum == N
    input_dtype        : dtype of the HBM streams fed to the kernel
                         (bfloat16 default for bandwidth; float32 for exact f32).
    Returns scalar float32 loss (== PyTorch PredictionLoss.forward output).
    """
    num_experts = len(expert_logits_list)
    n = int(expert_logits_list[0].shape[0])
    assert int(sum(num_alleles_per_site)) == n

    in_dtype = jnp.dtype(input_dtype)
    itemsize = in_dtype.itemsize
    sub = 8 * max(1, 4 // itemsize)            # sublane granularity: 8 (f32), 16 (bf16)

    # --- choose tile size (clamped so tiny inputs are not padded to huge tiles) ---
    rows_needed = max(1, _cdiv(n, LANES))
    tr = max(sub, min(_round_up(tile_rows, sub), _round_up(rows_needed, sub)))
    tile_elems = tr * LANES

    # --- chunking: only split when both chunks get equal, non-wasteful tile counts ---
    total_tiles = max(1, _cdiv(n, tile_elems))
    num_chunks = 1
    if max_chunks > 1 and total_tiles >= max_chunks:
        waste = _cdiv(total_tiles, max_chunks) * max_chunks - total_tiles
        if waste == 0 or total_tiles >= 8 * max_chunks:
            num_chunks = max_chunks
    tiles_per_chunk = _cdiv(total_tiles, num_chunks)
    total_tiles = num_chunks * tiles_per_chunk
    padded_n = total_tiles * tile_elems
    rows = padded_n // LANES
    pad = padded_n - n
    has_tail = pad > 0
    assert padded_n < 2 ** 31, "int32 index math in the tail mask"

    # --- wrapper glue (cheap, fusable passes; every big stream is in_dtype) ---
    # Each expert head stays a separate input (no [E, N] concatenate pass).
    logits_p = [
        jnp.pad(jnp.reshape(x, (n,)).astype(in_dtype), (0, pad)).reshape(rows, LANES)
        for x in expert_logits_list
    ]
    # repeat_interleave of the tiny gating table, done in in_dtype and directly to the
    # padded length (tail is filled with the last row; masked inside the kernel).
    repeats = jnp.asarray(num_alleles_per_site, dtype=jnp.int32)
    meta_p = jnp.repeat(meta_expert.astype(in_dtype).T, repeats, axis=1,
                        total_repeat_length=padded_n).reshape(num_experts, rows, LANES)
    tgt_p = jnp.pad(targets.astype(in_dtype), (0, pad)).reshape(rows, LANES)

    kernel = _make_prediction_loss_kernel(num_experts, n, tr, tiles_per_chunk, has_tail)

    def data_map(c, s):
        return (c * tiles_per_chunk + s, 0)

    def meta_map(c, s):
        return (0, c * tiles_per_chunk + s, 0)

    def out_map(c, s):
        return (c, 0)

    in_specs = ([pl.BlockSpec((tr, LANES), data_map) for _ in range(1 + num_experts)]
                + [pl.BlockSpec((num_experts, tr, LANES), meta_map)])
    out_spec = pl.BlockSpec((8, LANES), out_map)

    # Raise the scoped-VMEM limit only when the double-buffered tiles need it.
    block_bytes = (1 + 2 * num_experts) * tile_elems * itemsize
    vmem_limit = None
    if 2 * block_bytes > (12 << 20):
        vmem_limit = min(2 * block_bytes + (8 << 20), 56 << 20)

    partial = pl.pallas_call(
        kernel,
        out_shape=jax.ShapeDtypeStruct((num_chunks * 8, LANES), jnp.float32),
        grid_spec=pltpu.PrefetchScalarGridSpec(
            num_scalar_prefetch=0,
            grid=(num_chunks, tiles_per_chunk),
            in_specs=in_specs,
            out_specs=out_spec,
        ),
        compiler_params=pltpu.CompilerParams(
            dimension_semantics=("parallel", "arbitrary"),
            vmem_limit_bytes=vmem_limit,
        ),
    )(tgt_p, *logits_p, meta_p)

    return -jnp.sum(partial)


def _reference_loss(expert_logits_list, meta_expert, targets, num_alleles_per_site,
                    quantize_dtype=None):
    """Pure-JAX reference matching the PyTorch module (original formula).

    If quantize_dtype is given, logits/meta are round-tripped through that dtype to
    emulate the kernel's reduced-precision HBM streams (math stays f32).
    """
    logits = jnp.squeeze(jnp.stack(expert_logits_list, axis=1), axis=2).astype(jnp.float32)
    meta = meta_expert.astype(jnp.float32)
    if quantize_dtype is not None:
        logits = logits.astype(quantize_dtype).astype(jnp.float32)
        meta = meta.astype(quantize_dtype).astype(jnp.float32)
    n = logits.shape[0]
    tgt = targets.astype(jnp.float32)[:, None]
    repeats = jnp.asarray(num_alleles_per_site, dtype=jnp.int32)
    meta_rep = jnp.repeat(meta, repeats, axis=0, total_repeat_length=n)
    expert = jax.nn.sigmoid(logits)
    expert_probs = tgt * expert + (1.0 - tgt) * (1.0 - expert)
    system_probs = jnp.sum(expert_probs * meta_rep, axis=1)
    cushioned = system_probs + 1e-10
    logged = jnp.log(jnp.where(cushioned > 1.0 - 1e-10, system_probs, cushioned))
    return -jnp.sum(logged)


if __name__ == "__main__":
    key = jax.random.PRNGKey(0)
    num_experts = 3

    def make_case(k, num_sites, num_alleles_per_site):
        n = sum(num_alleles_per_site)
        k1, k2, k3 = jax.random.split(k, 3)
        logits = [
            jax.random.normal(jax.random.fold_in(k1, e), (n, 1), dtype=jnp.float32)
            for e in range(num_experts)
        ]
        meta = jax.nn.softmax(
            jax.random.normal(k2, (num_sites, num_experts), dtype=jnp.float32), axis=1)
        tgt = jax.random.bernoulli(k3, 0.5, (n,)).astype(jnp.int32)
        return logits, meta, tgt

    # --- test 1: tiny shapes, exact f32 path, single (masked) tile ---
    nall1 = [3, 5, 2, 6]                                   # N = 16
    lg1, meta1, tg1 = make_case(key, 4, nall1)
    loss1 = jax.block_until_ready(
        prediction_loss(lg1, meta1, tg1, nall1, input_dtype=jnp.float32))
    ref1 = jax.block_until_ready(_reference_loss(lg1, meta1, tg1, nall1))
    assert jnp.allclose(loss1, ref1, rtol=1e-5, atol=1e-4), (loss1, ref1)

    # --- test 2: multi-tile single chunk + tail mask, exact f32 path ---
    nall2 = [37 + (i % 20) for i in range(50)]             # N = 2275
    lg2, meta2, tg2 = make_case(jax.random.fold_in(key, 1), 50, nall2)
    loss2 = jax.block_until_ready(
        prediction_loss(lg2, meta2, tg2, nall2, tile_rows=8, max_chunks=1,
                        input_dtype=jnp.float32))
    ref2 = jax.block_until_ready(_reference_loss(lg2, meta2, tg2, nall2))
    assert jnp.allclose(loss2, ref2, rtol=1e-5, atol=1e-3), (loss2, ref2)

    # --- test 3: default bf16 streams, two parallel chunks (one full, one tail tile) ---
    loss3 = jax.block_until_ready(
        prediction_loss(lg2, meta2, tg2, nall2, tile_rows=16, max_chunks=2))
    ref3 = jax.block_until_ready(
        _reference_loss(lg2, meta2, tg2, nall2, quantize_dtype=jnp.bfloat16))
    assert jnp.allclose(loss3, ref3, rtol=5e-4, atol=5e-2), (loss3, ref3)

    # --- test 4: default (large, auto-clamped) tile path, bf16 streams ---
    loss4 = jax.block_until_ready(prediction_loss(lg2, meta2, tg2, nall2))
    assert jnp.allclose(loss4, ref3, rtol=5e-4, atol=5e-2), (loss4, ref3)

    print("KERNEL_OK")
</pallas_src>

<mosaic_0001>
module attributes {stable_mosaic.version = 11 : i64} {
  func.func @kernel(%arg0: i32, %arg1: i32, %arg2: memref<8x128xf32, #tpu.memory_space<vmem>>, %arg3: memref<8x128xf32, #tpu.memory_space<vmem>>, %arg4: memref<8x128xf32, #tpu.memory_space<vmem>>, %arg5: memref<8x128xf32, #tpu.memory_space<vmem>>, %arg6: memref<3x8x128xf32, #tpu.memory_space<vmem>>, %arg7: memref<8x128xf32, #tpu.memory_space<vmem>>) attributes {dimension_semantics = [#tpu.dimension_semantics<parallel>, #tpu.dimension_semantics<arbitrary>], iteration_bounds = array<i64: 1, 1>, scalar_prefetch = 0 : i64, scratch_operands = 0 : i64, tpu.core_type = #tpu.core_type<tc>, window_params = [{transform_indices = @transform_0, window_bounds = array<i64: 8, 128>}, {transform_indices = @transform_1, window_bounds = array<i64: 8, 128>}, {transform_indices = @transform_2, window_bounds = array<i64: 8, 128>}, {transform_indices = @transform_3, window_bounds = array<i64: 8, 128>}, {transform_indices = @transform_4, window_bounds = array<i64: 3, 8, 128>}, {transform_indices = @transform_5, window_bounds = array<i64: 8, 128>}]} {
    %c0_i32 = arith.constant 0 : i32
    %0 = arith.cmpi eq, %arg1, %c0_i32 : i32
    %1 = arith.extui %0 : i1 to i32
    %c0_i32_0 = arith.constant 0 : i32
    %2 = arith.cmpi ne, %1, %c0_i32_0 : i32
    scf.if %2 {
      %cst_26 = arith.constant 0.000000e+00 : f32
      %60 = vector.broadcast %cst_26 : f32 to vector<8x128xf32>
      %c0_27 = arith.constant 0 : index
      %c0_28 = arith.constant 0 : index
      %61 = vector.load %arg7[%c0_27, %c0_28] : memref<8x128xf32, #tpu.memory_space<vmem>>, vector<8x128xf32>
      tpu.vector_store %arg7[%c0_27, %c0_28], %60 {strides = array<i32>} : memref<8x128xf32, #tpu.memory_space<vmem>>, vector<8x128xf32>,
    } else {
    }
    %c0 = arith.constant 0 : index
    %c0_1 = arith.constant 0 : index
    %3 = vector.load %arg2[%c0, %c0_1] : memref<8x128xf32, #tpu.memory_space<vmem>>, vector<8x128xf32>
    %cst = arith.constant 5.000000e-01 : f32
    %4 = vector.broadcast %cst : f32 to vector<8x128xf32>
    %5 = arith.cmpf ogt, %3, %4 : vector<8x128xf32>
    %c0_2 = arith.constant 0 : index
    %c0_3 = arith.constant 0 : index
    %6 = vector.load %arg3[%c0_2, %c0_3] : memref<8x128xf32, #tpu.memory_space<vmem>>, vector<8x128xf32>
    %c0_4 = arith.constant 0 : index
    %c0_5 = arith.constant 0 : index
    %c0_6 = arith.constant 0 : index
    %7 = vector.load %arg6[%c0_4, %c0_5, %c0_6] : memref<3x8x128xf32, #tpu.memory_space<vmem>>, vector<1x8x128xf32>
    %8 = vector.shape_cast %7 : vector<1x8x128xf32> to vector<8x128xf32>
    %cst_7 = arith.constant 0.000000e+00 : f32
    %9 = vector.broadcast %cst_7 : f32 to vector<8x128xf32>
    %10 = arith.subf %9, %6 : vector<8x128xf32>
    %11 = arith.select %5, %6, %10 : vector<8x128xi1>, vector<8x128xf32>
    %12 = arith.negf %11 : vector<8x128xf32>
    %13 = math.exp %12 : vector<8x128xf32>
    %cst_8 = arith.constant 1.000000e+00 : f32
    %14 = vector.broadcast %cst_8 : f32 to vector<8x128xf32>
    %15 = arith.addf %14, %13 : vector<8x128xf32>
    %16 = arith.divf %14, %15 : vector<8x128xf32>
    %17 = arith.mulf %16, %8 : vector<8x128xf32>
    %c0_9 = arith.constant 0 : index
    %c0_10 = arith.constant 0 : index
    %18 = vector.load %arg4[%c0_9, %c0_10] : memref<8x128xf32, #tpu.memory_space<vmem>>, vector<8x128xf32>
    %c1 = arith.constant 1 : index
    %c0_11 = arith.constant 0 : index
    %c0_12 = arith.constant 0 : index
    %19 = vector.load %arg6[%c1, %c0_11, %c0_12] : memref<3x8x128xf32, #tpu.memory_space<vmem>>, vector<1x8x128xf32>
    %20 = vector.shape_cast %19 : vector<1x8x128xf32> to vector<8x128xf32>
    %cst_13 = arith.constant 0.000000e+00 : f32
    %21 = vector.broadcast %cst_13 : f32 to vector<8x128xf32>
    %22 = arith.subf %21, %18 : vector<8x128xf32>
    %23 = arith.select %5, %18, %22 : vector<8x128xi1>, vector<8x128xf32>
    %24 = arith.negf %23 : vector<8x128xf32>
    %25 = math.exp %24 : vector<8x128xf32>
    %cst_14 = arith.constant 1.000000e+00 : f32
    %26 = vector.broadcast %cst_14 : f32 to vector<8x128xf32>
    %27 = arith.addf %26, %25 : vector<8x128xf32>
    %28 = arith.divf %26, %27 : vector<8x128xf32>
    %29 = arith.mulf %28, %20 : vector<8x128xf32>
    %30 = arith.addf %17, %29 : vector<8x128xf32>
    %c0_15 = arith.constant 0 : index
    %c0_16 = arith.constant 0 : index
    %31 = vector.load %arg5[%c0_15, %c0_16] : memref<8x128xf32, #tpu.memory_space<vmem>>, vector<8x128xf32>
    %c2 = arith.constant 2 : index
    %c0_17 = arith.constant 0 : index
    %c0_18 = arith.constant 0 : index
    %32 = vector.load %arg6[%c2, %c0_17, %c0_18] : memref<3x8x128xf32, #tpu.memory_space<vmem>>, vector<1x8x128xf32>
    %33 = vector.shape_cast %32 : vector<1x8x128xf32> to vector<8x128xf32>
    %cst_19 = arith.constant 0.000000e+00 : f32
    %34 = vector.broadcast %cst_19 : f32 to vector<8x128xf32>
    %35 = arith.subf %34, %31 : vector<8x128xf32>
    %36 = arith.select %5, %31, %35 : vector<8x128xi1>, vector<8x128xf32>
    %37 = arith.negf %36 : vector<8x128xf32>
    %38 = math.exp %37 : vector<8x128xf32>
    %cst_20 = arith.constant 1.000000e+00 : f32
    %39 = vector.broadcast %cst_20 : f32 to vector<8x128xf32>
    %40 = arith.addf %39, %38 : vector<8x128xf32>
    %41 = arith.divf %39, %40 : vector<8x128xf32>
    %42 = arith.mulf %41, %33 : vector<8x128xf32>
    %43 = arith.addf %30, %42 : vector<8x128xf32>
    %cst_21 = arith.constant 1.000000e-10 : f32
    %44 = vector.broadcast %cst_21 : f32 to vector<8x128xf32>
    %45 = arith.addf %43, %44 : vector<8x128xf32>
    %cst_22 = arith.constant 1.000000e+00 : f32
    %46 = vector.broadcast %cst_22 : f32 to vector<8x128xf32>
    %47 = arith.cmpf ogt, %45, %46 : vector<8x128xf32>
    %48 = arith.select %47, %43, %45 : vector<8x128xi1>, vector<8x128xf32>
    %49 = math.log %48 : vector<8x128xf32>
    %c1_i32 = arith.constant 1 : i32
    %50 = arith.muli %arg0, %c1_i32 : i32
    %51 = arith.addi %50, %arg1 : i32
    %c1024_i32 = arith.constant 1024 : i32
    %52 = arith.muli %51, %c1024_i32 : i32
    %c1024_i32_23 = arith.constant 1024 : i32
    %53 = arith.addi %52, %c1024_i32_23 : i32
    %c16_i32 = arith.constant 16 : i32
    %54 = arith.cmpi sgt, %53, %c16_i32 : i32
    %true = arith.constant true
    %55 = arith.xori %54, %true : i1
    %56 = arith.extui %55 : i1 to i32
    %c0_i32_24 = arith.constant 0 : i32
    %57 = arith.cmpi ne, %56, %c0_i32_24 : i32
    scf.if %57 {
      %c0_26 = arith.constant 0 : index
      %c0_27 = arith.constant 0 : index
      %60 = vector.load %arg7[%c0_26, %c0_27] : memref<8x128xf32, #tpu.memory_space<vmem>>, vector<8x128xf32>
      %61 = vector.shape_cast %49 : vector<8x128xf32> to vector<1x8x128xf32>
      %cst_28 = arith.constant dense<0.000000e+00> : vector<8x128xf32>
      %62 = vector.multi_reduction <add>, %61, %cst_28 [0] : vector<1x8x128xf32> to vector<8x128xf32>
      %63 = arith.addf %60, %62 : vector<8x128xf32>
      %c0_29 = arith.constant 0 : index
      %c0_30 = arith.constant 0 : index
      %64 = vector.load %arg7[%c0_29, %c0_30] : memref<8x128xf32, #tpu.memory_space<vmem>>, vector<8x128xf32>
      tpu.vector_store %arg7[%c0_29, %c0_30], %63 {strides = array<i32>} : memref<8x128xf32, #tpu.memory_space<vmem>>, vector<8x128xf32>,
    } else {
    }
    %58 = arith.extui %54 : i1 to i32
    %c0_i32_25 = arith.constant 0 : i32
    %59 = arith.cmpi ne, %58, %c0_i32_25 : i32
    scf.if %59 {
      %60 = tpu.iota {dimensions = array<i32: 0>} : vector<8x128xi32>
      %61 = tpu.iota {dimensions = array<i32: 1>} : vector<8x128xi32>
      %c128_i32 = arith.constant 128 : i32
      %62 = vector.broadcast %c128_i32 : i32 to vector<8x128xi32>
      %63 = arith.muli %60, %62 : vector<8x128xi32>
      %64 = vector.broadcast %52 : i32 to vector<8x128xi32>
      %65 = arith.addi %64, %63 : vector<8x128xi32>
      %66 = arith.addi %65, %61 : vector<8x128xi32>
      %c16_i32_26 = arith.constant 16 : i32
      %67 = vector.broadcast %c16_i32_26 : i32 to vector<8x128xi32>
      %68 = arith.cmpi slt, %66, %67 : vector<8x128xi32>
      %c0_27 = arith.constant 0 : index
      %c0_28 = arith.constant 0 : index
      %69 = vector.load %arg7[%c0_27, %c0_28] : memref<8x128xf32, #tpu.memory_space<vmem>>, vector<8x128xf32>
      %cst_29 = arith.constant 0.000000e+00 : f32
      %70 = vector.broadcast %cst_29 : f32 to vector<8x128xf32>
      %71 = arith.select %68, %49, %70 : vector<8x128xi1>, vector<8x128xf32>
      %72 = vector.shape_cast %71 : vector<8x128xf32> to vector<1x8x128xf32>
      %cst_30 = arith.constant dense<0.000000e+00> : vector<8x128xf32>
      %73 = vector.multi_reduction <add>, %72, %cst_30 [0] : vector<1x8x128xf32> to vector<8x128xf32>
      %74 = arith.addf %69, %73 : vector<8x128xf32>
      %c0_31 = arith.constant 0 : index
      %c0_32 = arith.constant 0 : index
      %75 = vector.load %arg7[%c0_31, %c0_32] : memref<8x128xf32, #tpu.memory_space<vmem>>, vector<8x128xf32>
      tpu.vector_store %arg7[%c0_31, %c0_32], %74 {strides = array<i32>} : memref<8x128xf32, #tpu.memory_space<vmem>>, vector<8x128xf32>,
    } else {
    }
    return
  }
  func.func @transform_0(%arg0: i32, %arg1: i32) -> (i32, i32) {
    %c1_i32 = arith.constant 1 : i32
    %0 = arith.muli %arg0, %c1_i32 : i32
    %1 = arith.addi %0, %arg1 : i32
    %c0_i32 = arith.constant 0 : i32
    %c0_i32_0 = arith.constant 0 : i32
    return %1, %c0_i32 : i32, i32
  }
  func.func @transform_1(%arg0: i32, %arg1: i32) -> (i32, i32) {
    %c1_i32 = arith.constant 1 : i32
    %0 = arith.muli %arg0, %c1_i32 : i32
    %1 = arith.addi %0, %arg1 : i32
    %c0_i32 = arith.constant 0 : i32
    %c0_i32_0 = arith.constant 0 : i32
    return %1, %c0_i32 : i32, i32
  }
  func.func @transform_2(%arg0: i32, %arg1: i32) -> (i32, i32) {
    %c1_i32 = arith.constant 1 : i32
    %0 = arith.muli %arg0, %c1_i32 : i32
    %1 = arith.addi %0, %arg1 : i32
    %c0_i32 = arith.constant 0 : i32
    %c0_i32_0 = arith.constant 0 : i32
    return %1, %c0_i32 : i32, i32
  }
  func.func @transform_3(%arg0: i32, %arg1: i32) -> (i32, i32) {
    %c1_i32 = arith.constant 1 : i32
    %0 = arith.muli %arg0, %c1_i32 : i32
    %1 = arith.addi %0, %arg1 : i32
    %c0_i32 = arith.constant 0 : i32
    %c0_i32_0 = arith.constant 0 : i32
    return %1, %c0_i32 : i32, i32
  }
  func.func @transform_4(%arg0: i32, %arg1: i32) -> (i32, i32, i32) {
    %c1_i32 = arith.constant 1 : i32
    %0 = arith.muli %arg0, %c1_i32 : i32
    %1 = arith.addi %0, %arg1 : i32
    %c0_i32 = arith.constant 0 : i32
    %c0_i32_0 = arith.constant 0 : i32
    %c0_i32_1 = arith.constant 0 : i32
    return %c0_i32, %1, %c0_i32_0 : i32, i32, i32
  }
  func.func @transform_5(%arg0: i32, %arg1: i32) -> (i32, i32) {
    %c0_i32 = arith.constant 0 : i32
    %c0_i32_0 = arith.constant 0 : i32
    return %arg0, %c0_i32 : i32, i32
  }
}

</mosaic_0001>

<bundles_post_ra>
// kernel: tpu_custom_call.1
= control target key start
LH: loop header
LB: loop body
LE: loop exit
PB: predicated region body
PF: predicated region fallthrough
CT: control target
= control target key end

     0   :  { %10 = vsyncpa [#allocation3], 0  ;;  %s454_s0 = inlined_call_operand.hbm [shape: f32[8,128], index: 0, kind: input, shape index: {}]   ;;  %s455_s1 = inlined_call_operand.hbm [shape: f32[8,128], index: 1, kind: input, shape index: {}]   ;;  %s456_s2 = inlined_call_operand.hbm [shape: f32[8,128], index: 2, kind: input, shape index: {}]   ;;  %s457_s3 = inlined_call_operand.vmem [shape: f32[8,128], index: 3, kind: input, shape index: {}]   ;;  %s458_s4 = inlined_call_operand.hbm [shape: f32[3,8,128], index: 4, kind: input, shape index: {}]   ;;  %s459_s5 = inlined_call_operand.hbm [shape: f32[8,128], index: 5, kind: output, shape index: {}]  }
   0x1   :  { %11 = vsyncpa [#allocation6], 0 }
   0x2   :  { %12 = vsyncpa [#allocation9], 0 }
   0x3   :  { %13 = vsyncpa [#allocation4], 0  ;;  %s347_s18 = smov [#allocation5]   ;;  %s348_s20 = smov [#allocation2]  }
   0x4   :  { %s36_s19 = sshll.u32 %s347_s18, 4  ;;  %s23_s21 = sshll.u32 %s348_s20, 4  ;;  %s37_s19 = int_to_ptr.vmem [resolvable:$true] %s36_s19  ;;  %s24_s21 = int_to_ptr.vmem [resolvable:$true] %s23_s21 }
   0x5   :  { %s229_s24 = scalar_lea.hbm %s455_s1, 128 }
   0x6   :  { %p230_p0 = scmp.ne.s32.totalorder %s455_s1, %s229_s24  ;;  %p233_p1 = scmp.lt.u32.totalorder %s229_s24, %s455_s1 }
   0x8   :  { %p235_p2 = pnand %p233_p1, %p230_p0 }
   0xa   :  { %238 = shalt.err (!%p235_p2)
}
   0xb   :  { %s239_s29 = scalar_lea.vmem %s37_s19, 128  ;;  %p244_p4 = scmp.lt.s32.totalorder %s37_s19, %s37_s19 }
   0xc   :  { %p240_p3 = scmp.ne.s32.totalorder %s37_s19, %s239_s29  ;;  %p245_p5 = scmp.lt.s32.totalorder %s239_s29, %s239_s29 }
   0xe   :  { %p246_p6 = por %p245_p5, %p244_p4 }
  0x10   :  { %p247_p7 = pnand %p246_p6, %p240_p3 }
  0x12   :  { %250 = shalt.err (!%p247_p7)
}
  0x13   :  { %39 = dma.hbm_to_vmem [thread:$0]  %s455_s1, 128, %s37_s19, [#allocation6]  }
  0x14   :  { %s251_s9 = scalar_lea.hbm %s454_s0, 128 }
  0x15   :  { %p252_p8 = scmp.ne.s32.totalorder %s454_s0, %s251_s9  ;;  %p255_p9 = scmp.lt.u32.totalorder %s251_s9, %s454_s0 }
  0x17   :  { %p257_p10 = pnand %p255_p9, %p252_p8 }
  0x19   :  { %260 = shalt.err (!%p257_p10)
}
  0x1a   :  { %s261_s14 = scalar_lea.vmem %s24_s21, 128  ;;  %p266_p12 = scmp.lt.s32.totalorder %s24_s21, %s24_s21 }
  0x1b   :  { %p262_p11 = scmp.ne.s32.totalorder %s24_s21, %s261_s14  ;;  %p267_p13 = scmp.lt.s32.totalorder %s261_s14, %s261_s14 }
  0x1d   :  { %p268_p0 = por %p267_p13, %p266_p12 }
  0x1f   :  { %p269_p1 = pnand %p268_p0, %p262_p11 }
  0x21   :  { %272 = shalt.err (!%p269_p1)
}
  0x22   :  { %26 = dma.hbm_to_vmem [thread:$0]  %s454_s0, 128, %s24_s21, [#allocation3]  }
  0x23   :  { %s349_s16 = smov [#allocation7]   ;;  %s350_s18 = smov [#allocation8]  }
  0x24   :  { %s49_s17 = sshll.u32 %s349_s16, 4  ;;  %s69_s19 = sshll.u32 %s350_s18, 4  ;;  %s50_s17 = int_to_ptr.vmem [resolvable:$true] %s49_s17  ;;  %s408_s19 = int_to_ptr.vmem [resolvable:$true] %s69_s19 }
  0x25   :  { %s273_s23 = scalar_lea.hbm %s456_s2, 128 }
  0x26   :  { %p274_p2 = scmp.ne.s32.totalorder %s456_s2, %s273_s23  ;;  %p277_p3 = scmp.lt.u32.totalorder %s273_s23, %s456_s2 }
  0x28   :  { %p279_p4 = pnand %p277_p3, %p274_p2 }
  0x2a   :  { %282 = shalt.err (!%p279_p4)
}
  0x2b   :  { %s283_s0 = scalar_lea.vmem %s50_s17, 128  ;;  %p288_p6 = scmp.lt.s32.totalorder %s50_s17, %s50_s17 }
  0x2c   :  { %p284_p5 = scmp.ne.s32.totalorder %s50_s17, %s283_s0  ;;  %p289_p7 = scmp.lt.s32.totalorder %s283_s0, %s283_s0 }
  0x2e   :  { %p290_p8 = por %p289_p7, %p288_p6 }
  0x30   :  { %p291_p9 = pnand %p290_p8, %p284_p5 }
  0x32   :  { %294 = shalt.err (!%p291_p9)
}
  0x33   :  { %52 = dma.hbm_to_vmem [thread:$0]  %s456_s2, 128, %s50_s17, [#allocation6]  }
  0x34   :  { %s295_s6 = scalar_lea.hbm %s458_s4, 384 }
  0x35   :  { %p296_p10 = scmp.ne.s32.totalorder %s458_s4, %s295_s6  ;;  %p299_p11 = scmp.lt.u32.totalorder %s295_s6, %s458_s4 }
  0x37   :  { %p301_p12 = pnand %p299_p11, %p296_p10 }
  0x39   :  { %304 = shalt.err (!%p301_p12)
}
  0x3a   :  { %s305_s11 = scalar_lea.vmem %s408_s19, 384  ;;  %p310_p0 = scmp.lt.s32.totalorder %s408_s19, %s408_s19 }
  0x3b   :  { %p306_p13 = scmp.ne.s32.totalorder %s408_s19, %s305_s11  ;;  %p311_p1 = scmp.lt.s32.totalorder %s305_s11, %s305_s11 }
  0x3d   :  { %p312_p2 = por %p311_p1, %p310_p0 }
  0x3f   :  { %p313_p3 = pnand %p312_p2, %p306_p13 }
  0x41   :  { %316 = shalt.err (!%p313_p3)
}
  0x42   :  { %s351_s2 = smov 128   ;;  %s352_s12 = smov 8  }
  0x43   :  { %75 = dma.hbm_to_vmem [thread:$0]  %s458_s4, 384, %s408_s19, [#allocation9], %s351_s2, %s351_s2, %s352_s12  }
  0x44   :  { %339 = dma.done.wait [#allocation3], 128  }
  0x45   :  { %340 = vsyncadd [#allocation3], 4294967168 }
  0x46   :  { %341 = dma.done.wait [#allocation6], 256  }
  0x47   :  { %342 = vsyncadd [#allocation6], 4294967040 }
  0x48   :  { %343 = dma.done.wait [#allocation9], 384  }
  0x49   :  { %344 = vsyncadd [#allocation9], 4294966912  ;;  %v108_v0 = vld [vmem:[#allocation2] sm:$0xff]  ;;  %v110_v1 = vld [vmem:[#allocation5] sm:$0xff]  ;;  %v167_v30 = vlaneseq }
  0x4a   :  { %vm109_vm0 = vcmp.gt.f32.partialorder %v108_v0, 0.5  ;;  %v112_v2 = vsub.f32 0.0, %v110_v1  ;;  %v121_v3 = vld [vmem:[#allocation7] sm:$0xff]  ;;  %v134_v4 = vld [vmem:[%s457_s3] sm:$0xff]  ;;  %v111_v19 = vld [vmem:[#allocation8] sm:$0xff]  ;;  %s353_s3 = smov [#allocation10]  }
  0x4b   :  { %v124_v5 = vsub.f32 0.0, %v121_v3  ;;  %v137_v6 = vsub.f32 0.0, %v134_v4  ;;  %v123_v20 = vld [vmem:[#allocation8 + $0x8] sm:$0xff]  ;;  %v136_v22 = vld [vmem:[#allocation8 + $0x10] sm:$0xff]  ;;  %v168_v32 = vshrl.u32 %v167_v30, 7  ;;  %v170_v34 = vand.u32 127, %v167_v30 }
  0x4c   :  { %v113_v7 = vsel %vm109_vm0, %v110_v1, %v112_v2  ;;  %s187_s4 = sshll.u32 %s353_s3, 4  ;;  %s188_s4 = int_to_ptr.vmem [resolvable:$true] %s187_s4 }
  0x4d   :  { %v204_v8 = vmul.f32 -1.442695, %v113_v7  ;;  %v125_v9 = vsel %vm109_vm0, %v121_v3, %v124_v5  ;;  %v138_v10 = vsel %vm109_vm0, %v134_v4, %v137_v6  ;;  %v171_v35 = vmul.u32 128, %v168_v32  ;;  %s317_s16 = scalar_lea.vmem %s188_s4, 128  ;;  %p322_p5 = scmp.lt.s32.totalorder %s188_s4, %s188_s4 }
  0x4e   :  { %v205_v11 = vmul.f32 -1.442695, %v125_v9  ;;  %v206_v12 = vmul.f32 -1.442695, %v138_v10  ;;  %p318_p4 = scmp.ne.s32.totalorder %s188_s4, %s317_s16  ;;  %p323_p6 = scmp.lt.s32.totalorder %s317_s16, %s317_s16 }
  0x4f   :  { %215 = vpow2.f32 %v204_v8  ;;  %v174_v36 = vadd.s32 %v171_v35, %v170_v34 }
  0x50   :  { %217 = vpow2.f32 %v205_v11  ;;  %p324_p7 = por %p323_p6, %p322_p5 }
  0x51   :  { %219 = vpow2.f32 %v206_v12  ;;  %vm175_vm2 = vcmp.lt.s32.totalorder %v174_v36, 16 }
  0x52   :  { %p325_p8 = pnand %p324_p7, %p318_p4 }
  0x59   :  { %v216_v13 = vpop.eup %215 }
  0x5a   :  { %v218_v14 = vpop.eup %217  ;;  %v117_v15 = vadd.f32 1.0, %v216_v13 }
  0x5b   :  { %v220_v16 = vpop.eup %219  ;;  %v129_v17 = vadd.f32 1.0, %v218_v14 }
  0x5c   :  { %221 = vrcp.f32 %v117_v15  ;;  %v142_v18 = vadd.f32 1.0, %v220_v16 }
  0x5d   :  { %223 = vrcp.f32 %v129_v17 }
  0x5e   :  { %225 = vrcp.f32 %v142_v18 }
  0x66   :  { %v222_v21 = vpop.eup %221 }
  0x67   :  { %v224_v23 = vpop.eup %223  ;;  %v120_v24 = vmul.f32 %v222_v21, %v111_v19 }
  0x68   :  { %v226_v25 = vpop.eup %225  ;;  %v132_v26 = vmul.f32 %v224_v23, %v123_v20 }
  0x69   :  { %v145_v27 = vmul.f32 %v226_v25, %v136_v22 }
  0x6a   :  { %v133_v28 = vadd.f32 %v132_v26, %v120_v24 }
  0x6c   :  { %v146_v29 = vadd.f32 %v145_v27, %v133_v28 }
  0x6e   :  { %v147_v31 = vadd.f32 1e-10, %v146_v29 }
  0x70   :  { %vm148_vm1 = vcmp.gt.f32.partialorder %v147_v31, 1.0 }
  0x71   :  { %v149_v33 = vsel %vm148_vm1, %v146_v29, %v147_v31 }
  0x72   :  { %227 = vlog2.f32 %v149_v33 }
  0x7c   :  { %v228_v37 = vpop.eup %227 }
  0x7d   :  { %v151_v38 = vmul.f32 0.6931472, %v228_v37 }
  0x7f   :  { %v177_v39 = vsel %vm175_vm2, %v151_v38, 0.0 }
  0x80   :  { %180 = vst [vmem:[#allocation10] sm:$0xff] %v177_v39 }
  0x81   :  { %328 = shalt.err (!%p325_p8)
}
  0x82   :  { %s329_s19 = scalar_lea.hbm %s459_s5, 128 }
  0x83   :  { %p330_p9 = scmp.ne.s32.totalorder %s459_s5, %s329_s19  ;;  %p333_p10 = scmp.lt.u32.totalorder %s329_s19, %s459_s5 }
  0x85   :  { %p335_p11 = pnand %p333_p10, %p330_p9 }
  0x87   :  { %338 = shalt.err (!%p335_p11)
}
  0x88   :  { %190 = dma.vmem_to_hbm [thread:$0]  %s188_s4, 128, %s459_s5, [#allocation4]  }
  0x89   :  { %345 = dma.done.wait [#allocation4], 128  }
  0x8a   :  { %346 = vsyncadd [#allocation4], 4294967168 }
  0x8b   :  { %194 = vsyncpa [#allocation3], 1 }
  0x8c   :  { %195 = vsyncpa [#allocation6], 1 }
  0x8d   :  { %196 = vsyncpa [#allocation9], 1 }
  0x8e   :  { %197 = vsyncpa [#allocation4], 1 }

</bundles_post_ra>
